<compile_context>
chip_gen: v6e
topology: v6e:2x2x1
jax: 0.10.0
libtpu: 0.0.40
codegen_flags: <defaults>
</compile_context>

<pallas_src>
import functools

import jax
import jax.numpy as jnp
from jax.experimental import pallas as pl
from jax.experimental.pallas import tpu as pltpu


def _ce_kernel(logits_ref, tgt_ref, loss_ref, cnt_ref, *,
               hw, tw, chunk_j, ignore_index):
    p = pl.program_id(1)    # spatial chunk (parallel)
    jj = pl.program_id(2)   # block within chunk (reduction axis)

    x = logits_ref[...].astype(jnp.float32)      # (1, C, TW)
    t = tgt_ref[...]                             # (1, 1, TW) int32
    _, c, _ = x.shape

    # Numerically stable log-sum-exp over the class (sublane) axis.  The
    # target gather reuses xm = x - m, so:
    #   loss = (m + log sum exp(x - m)) - x_t = log sum exp(xm) - xm_t
    m = jnp.max(x, axis=1, keepdims=True)                               # (1,1,TW)
    xm = x - m
    lse = jnp.log(jnp.sum(jnp.exp(xm), axis=1, keepdims=True))          # (1,1,TW)

    # Lane-invariant class iota; the compare broadcasts against the targets.
    cls_ids = jax.lax.broadcasted_iota(jnp.int32, (1, c, 1), 1)
    xm_t = jnp.sum(jnp.where(cls_ids == t, xm, 0.0),
                   axis=1, keepdims=True)                               # (1,1,TW)

    loss = lse - xm_t                                                   # (1,1,TW)

    # Mask the out-of-bounds spatial tail and ignore_index pixels.
    # jnp.where is a select, so garbage (NaN/Inf) in padded tails cannot leak.
    col0 = (p * chunk_j + jj) * tw
    col_ids = jax.lax.broadcasted_iota(jnp.int32, (1, 1, tw), 2) + col0
    valid = (col_ids < hw) & (t != ignore_index)
    loss = jnp.where(valid, loss, 0.0)
    cnt = jnp.where(valid, 1.0, 0.0)

    @pl.when(jj == 0)
    def _():
        loss_ref[...] = jnp.zeros_like(loss_ref)
        cnt_ref[...] = jnp.zeros_like(cnt_ref)

    loss_ref[...] += loss
    cnt_ref[...] += cnt


def _pick_tile_w(hw, c, itemsize, budget_bytes=4 << 20):
    """Lane-dense spatial tile width: multiple of 128, ~4 MiB of logits/block."""
    if hw <= 128:
        return hw                      # full spatial dim (allowed block shape)
    tw = budget_bytes // max(1, c * itemsize)
    tw = max(128, min(tw, hw))
    return (tw // 128) * 128


def cross_entropy_loss_2d(logits_nchw, target_nhw, *, ignore_index=-100):
    """Equivalent of nn.NLLLoss()(F.log_softmax(output, dim=1), target)."""
    # TODO(synk): per-class `weight` argument not implemented (module default is None).
    n, c, h, w = logits_nchw.shape
    assert target_nhw.shape == (n, h, w)
    hw = h * w

    # Free reshapes only — keep the native NCHW memory layout (no transpose).
    x = logits_nchw.reshape(n, c, hw)
    t = target_nhw.reshape(n, 1, hw).astype(jnp.int32)

    tw = _pick_tile_w(hw, c, jnp.dtype(logits_nchw.dtype).itemsize)
    num_j = pl.cdiv(hw, tw)

    # Split spatial blocks into two parallel chunks so v7x's 2nd TensorCore is
    # used even when N == 1.  Harmless loop on single-TC chips (v5e/v6e).
    p_chunks = 2 if num_j >= 2 else 1
    chunk_j = pl.cdiv(num_j, p_chunks)

    def in_map(i, p, jj):
        # Clamp: when num_j is odd, the overshoot step of chunk p=1 reloads
        # the last block, but its contribution is fully masked in-kernel
        # (its global column ids are all >= hw).
        return (i, 0, jnp.minimum(p * chunk_j + jj, num_j - 1))

    def out_map(i, p, jj):
        return (i, 0, p)   # resident across jj (the reduction axis)

    loss_parts, cnt_parts = pl.pallas_call(
        functools.partial(_ce_kernel, hw=hw, tw=tw, chunk_j=chunk_j,
                          ignore_index=ignore_index),
        out_shape=(
            jax.ShapeDtypeStruct((n, 1, p_chunks * tw), jnp.float32),  # loss
            jax.ShapeDtypeStruct((n, 1, p_chunks * tw), jnp.float32),  # count
        ),
        grid_spec=pltpu.PrefetchScalarGridSpec(
            num_scalar_prefetch=0,
            grid=(n, p_chunks, chunk_j),
            in_specs=[
                pl.BlockSpec((1, c, tw), in_map),   # logits tile (lane-dense)
                pl.BlockSpec((1, 1, tw), in_map),   # target tile (lane-dense)
            ],
            out_specs=[
                pl.BlockSpec((1, 1, tw), out_map),  # loss accumulator
                pl.BlockSpec((1, 1, tw), out_map),  # valid-count accumulator
            ],
        ),
        compiler_params=pltpu.CompilerParams(
            dimension_semantics=("parallel", "parallel", "arbitrary"),
            vmem_limit_bytes=48 << 20),
    )(x, t)

    total = jnp.sum(loss_parts)
    count = jnp.sum(cnt_parts)
    # PyTorch 'mean' reduction divides by the number of non-ignored targets
    # (NaN if every pixel is ignored, matching PyTorch).
    return (total / count).astype(jnp.float32)


if __name__ == "__main__":
    key = jax.random.PRNGKey(0)
    k1, k2, k3, k4, k5 = jax.random.split(key, 5)

    # Test 1: shapes implied by the module forward.
    N, C, H, W = 2, 4, 16, 16
    logits = jax.random.normal(k1, (N, C, H, W), dtype=jnp.float32)
    target = jax.random.randint(k2, (N, H, W), 0, C, dtype=jnp.int32)

    loss = cross_entropy_loss_2d(logits, target)
    loss = jax.block_until_ready(loss)

    logp = jax.nn.log_softmax(logits, axis=1)
    ref = -jnp.mean(jnp.take_along_axis(logp, target[:, None, :, :], axis=1))
    assert jnp.allclose(loss, ref, atol=1e-5, rtol=1e-5), (loss, ref)

    # Test 2: C not a multiple of 8, spatial size not a multiple of 128
    # (exercises tail masking + the two-chunk parallel path), plus
    # ignore_index pixels and N == 1.
    N2, C2, H2, W2 = 1, 5, 24, 40
    logits2 = jax.random.normal(k3, (N2, C2, H2, W2), dtype=jnp.float32)
    target2 = jax.random.randint(k4, (N2, H2, W2), 0, C2, dtype=jnp.int32)
    ign = jax.random.bernoulli(k5, 0.1, (N2, H2, W2))
    target2 = jnp.where(ign, -100, target2)

    loss2 = cross_entropy_loss_2d(logits2, target2)
    loss2 = jax.block_until_ready(loss2)

    logp2 = jax.nn.log_softmax(logits2, axis=1)
    safe_t2 = jnp.where(ign, 0, target2)
    nll2 = -jnp.take_along_axis(logp2, safe_t2[:, None, :, :], axis=1)[:, 0]
    ref2 = jnp.sum(jnp.where(ign, 0.0, nll2)) / jnp.sum(~ign)
    assert jnp.allclose(loss2, ref2, atol=1e-5, rtol=1e-5), (loss2, ref2)

    print("KERNEL_OK")
</pallas_src>

<mosaic_0001>
module attributes {stable_mosaic.version = 11 : i64} {
  func.func @_ce_kernel(%arg0: i32, %arg1: i32, %arg2: i32, %arg3: memref<1x4x256xf32, #tpu.memory_space<vmem>>, %arg4: memref<1x1x256xi32, #tpu.memory_space<vmem>>, %arg5: memref<1x1x256xf32, #tpu.memory_space<vmem>>, %arg6: memref<1x1x256xf32, #tpu.memory_space<vmem>>) attributes {dimension_semantics = [#tpu.dimension_semantics<parallel>, #tpu.dimension_semantics<parallel>, #tpu.dimension_semantics<arbitrary>], iteration_bounds = array<i64: 2, 1, 1>, scalar_prefetch = 0 : i64, scratch_operands = 0 : i64, tpu.core_type = #tpu.core_type<tc>, window_params = [{transform_indices = @transform_0, window_bounds = array<i64: 1, 4, 256>}, {transform_indices = @transform_1, window_bounds = array<i64: 1, 1, 256>}, {transform_indices = @transform_2, window_bounds = array<i64: 1, 1, 256>}, {transform_indices = @transform_3, window_bounds = array<i64: 1, 1, 256>}]} {
    %c0 = arith.constant 0 : index
    %c0_0 = arith.constant 0 : index
    %c0_1 = arith.constant 0 : index
    %0 = vector.load %arg3[%c0, %c0_0, %c0_1] : memref<1x4x256xf32, #tpu.memory_space<vmem>>, vector<1x4x256xf32>
    %c0_2 = arith.constant 0 : index
    %c0_3 = arith.constant 0 : index
    %c0_4 = arith.constant 0 : index
    %1 = vector.load %arg4[%c0_2, %c0_3, %c0_4] : memref<1x1x256xi32, #tpu.memory_space<vmem>>, vector<1x1x256xi32>
    %cst = arith.constant dense<0xFF800000> : vector<1x256xf32>
    %2 = vector.multi_reduction <maximumf>, %0, %cst [1] : vector<1x4x256xf32> to vector<1x256xf32>
    %3 = vector.shape_cast %2 : vector<1x256xf32> to vector<1x1x256xf32>
    %4 = vector.broadcast %3 : vector<1x1x256xf32> to vector<1x4x256xf32>
    %5 = arith.subf %0, %4 : vector<1x4x256xf32>
    %6 = math.exp %5 : vector<1x4x256xf32>
    %cst_5 = arith.constant dense<0.000000e+00> : vector<1x256xf32>
    %7 = vector.multi_reduction <add>, %6, %cst_5 [1] : vector<1x4x256xf32> to vector<1x256xf32>
    %8 = vector.shape_cast %7 : vector<1x256xf32> to vector<1x1x256xf32>
    %9 = math.log %8 : vector<1x1x256xf32>
    %10 = tpu.iota {dimensions = array<i32: 1>} : vector<1x4x1xi32>
    %11 = vector.broadcast %10 : vector<1x4x1xi32> to vector<1x4x256xi32>
    %12 = vector.broadcast %1 : vector<1x1x256xi32> to vector<1x4x256xi32>
    %13 = arith.cmpi eq, %11, %12 : vector<1x4x256xi32>
    %cst_6 = arith.constant 0.000000e+00 : f32
    %14 = vector.broadcast %cst_6 : f32 to vector<1x4x256xf32>
    %15 = arith.select %13, %5, %14 : vector<1x4x256xi1>, vector<1x4x256xf32>
    %cst_7 = arith.constant dense<0.000000e+00> : vector<1x256xf32>
    %16 = vector.multi_reduction <add>, %15, %cst_7 [1] : vector<1x4x256xf32> to vector<1x256xf32>
    %17 = vector.shape_cast %16 : vector<1x256xf32> to vector<1x1x256xf32>
    %18 = arith.subf %9, %17 : vector<1x1x256xf32>
    %c1_i32 = arith.constant 1 : i32
    %19 = arith.muli %arg1, %c1_i32 : i32
    %20 = arith.addi %19, %arg2 : i32
    %c256_i32 = arith.constant 256 : i32
    %21 = arith.muli %20, %c256_i32 : i32
    %22 = tpu.iota {dimensions = array<i32: 2>} : vector<1x1x256xi32>
    %23 = vector.broadcast %21 : i32 to vector<1x1x256xi32>
    %24 = arith.addi %22, %23 : vector<1x1x256xi32>
    %c256_i32_8 = arith.constant 256 : i32
    %25 = vector.broadcast %c256_i32_8 : i32 to vector<1x1x256xi32>
    %26 = arith.cmpi slt, %24, %25 : vector<1x1x256xi32>
    %c-100_i32 = arith.constant -100 : i32
    %27 = vector.broadcast %c-100_i32 : i32 to vector<1x1x256xi32>
    %28 = arith.cmpi ne, %1, %27 : vector<1x1x256xi32>
    %29 = arith.andi %26, %28 : vector<1x1x256xi1>
    %cst_9 = arith.constant 0.000000e+00 : f32
    %30 = vector.broadcast %cst_9 : f32 to vector<1x1x256xf32>
    %31 = arith.select %29, %18, %30 : vector<1x1x256xi1>, vector<1x1x256xf32>
    %cst_10 = arith.constant 1.000000e+00 : f32
    %cst_11 = arith.constant 0.000000e+00 : f32
    %32 = vector.broadcast %cst_10 : f32 to vector<1x1x256xf32>
    %33 = vector.broadcast %cst_11 : f32 to vector<1x1x256xf32>
    %34 = arith.select %29, %32, %33 : vector<1x1x256xi1>, vector<1x1x256xf32>
    %c0_i32 = arith.constant 0 : i32
    %35 = arith.cmpi eq, %arg2, %c0_i32 : i32
    %36 = arith.extui %35 : i1 to i32
    %c0_i32_12 = arith.constant 0 : i32
    %37 = arith.cmpi ne, %36, %c0_i32_12 : i32
    scf.if %37 {
      %cst_25 = arith.constant 0.000000e+00 : f32
      %44 = vector.broadcast %cst_25 : f32 to vector<1x1x256xf32>
      %c0_26 = arith.constant 0 : index
      %c0_27 = arith.constant 0 : index
      %c0_28 = arith.constant 0 : index
      %45 = vector.load %arg5[%c0_26, %c0_27, %c0_28] : memref<1x1x256xf32, #tpu.memory_space<vmem>>, vector<1x1x256xf32>
      tpu.vector_store %arg5[%c0_26, %c0_27, %c0_28], %44 {strides = array<i32>} : memref<1x1x256xf32, #tpu.memory_space<vmem>>, vector<1x1x256xf32>,
      %cst_29 = arith.constant 0.000000e+00 : f32
      %46 = vector.broadcast %cst_29 : f32 to vector<1x1x256xf32>
      %c0_30 = arith.constant 0 : index
      %c0_31 = arith.constant 0 : index
      %c0_32 = arith.constant 0 : index
      %47 = vector.load %arg6[%c0_30, %c0_31, %c0_32] : memref<1x1x256xf32, #tpu.memory_space<vmem>>, vector<1x1x256xf32>
      tpu.vector_store %arg6[%c0_30, %c0_31, %c0_32], %46 {strides = array<i32>} : memref<1x1x256xf32, #tpu.memory_space<vmem>>, vector<1x1x256xf32>,
    } else {
    }
    %c0_13 = arith.constant 0 : index
    %c0_14 = arith.constant 0 : index
    %c0_15 = arith.constant 0 : index
    %38 = vector.load %arg5[%c0_13, %c0_14, %c0_15] : memref<1x1x256xf32, #tpu.memory_space<vmem>>, vector<1x1x256xf32>
    %39 = arith.addf %38, %31 : vector<1x1x256xf32>
    %c0_16 = arith.constant 0 : index
    %c0_17 = arith.constant 0 : index
    %c0_18 = arith.constant 0 : index
    %40 = vector.load %arg5[%c0_16, %c0_17, %c0_18] : memref<1x1x256xf32, #tpu.memory_space<vmem>>, vector<1x1x256xf32>
    tpu.vector_store %arg5[%c0_16, %c0_17, %c0_18], %39 {strides = array<i32>} : memref<1x1x256xf32, #tpu.memory_space<vmem>>, vector<1x1x256xf32>,
    %c0_19 = arith.constant 0 : index
    %c0_20 = arith.constant 0 : index
    %c0_21 = arith.constant 0 : index
    %41 = vector.load %arg6[%c0_19, %c0_20, %c0_21] : memref<1x1x256xf32, #tpu.memory_space<vmem>>, vector<1x1x256xf32>
    %42 = arith.addf %41, %34 : vector<1x1x256xf32>
    %c0_22 = arith.constant 0 : index
    %c0_23 = arith.constant 0 : index
    %c0_24 = arith.constant 0 : index
    %43 = vector.load %arg6[%c0_22, %c0_23, %c0_24] : memref<1x1x256xf32, #tpu.memory_space<vmem>>, vector<1x1x256xf32>
    tpu.vector_store %arg6[%c0_22, %c0_23, %c0_24], %42 {strides = array<i32>} : memref<1x1x256xf32, #tpu.memory_space<vmem>>, vector<1x1x256xf32>,
    return
  }
  func.func @transform_0(%arg0: i32, %arg1: i32, %arg2: i32) -> (i32, i32, i32) {
    %c1_i32 = arith.constant 1 : i32
    %0 = arith.muli %arg1, %c1_i32 : i32
    %1 = arith.addi %0, %arg2 : i32
    %c0_i32 = arith.constant 0 : i32
    %2 = arith.minsi %1, %c0_i32 : i32
    %c0_i32_0 = arith.constant 0 : i32
    %c0_i32_1 = arith.constant 0 : i32
    return %arg0, %c0_i32_0, %2 : i32, i32, i32
  }
  func.func @transform_1(%arg0: i32, %arg1: i32, %arg2: i32) -> (i32, i32, i32) {
    %c1_i32 = arith.constant 1 : i32
    %0 = arith.muli %arg1, %c1_i32 : i32
    %1 = arith.addi %0, %arg2 : i32
    %c0_i32 = arith.constant 0 : i32
    %2 = arith.minsi %1, %c0_i32 : i32
    %c0_i32_0 = arith.constant 0 : i32
    %c0_i32_1 = arith.constant 0 : i32
    return %arg0, %c0_i32_0, %2 : i32, i32, i32
  }
  func.func @transform_2(%arg0: i32, %arg1: i32, %arg2: i32) -> (i32, i32, i32) {
    %c0_i32 = arith.constant 0 : i32
    %c0_i32_0 = arith.constant 0 : i32
    return %arg0, %c0_i32, %arg1 : i32, i32, i32
  }
  func.func @transform_3(%arg0: i32, %arg1: i32, %arg2: i32) -> (i32, i32, i32) {
    %c0_i32 = arith.constant 0 : i32
    %c0_i32_0 = arith.constant 0 : i32
    return %arg0, %c0_i32, %arg1 : i32, i32, i32
  }
}

</mosaic_0001>

<bundles_post_ra>
// kernel: tpu_custom_call.1
= control target key start
LH: loop header
LB: loop body
LE: loop exit
PB: predicated region body
PF: predicated region fallthrough
CT: control target
= control target key end

     0   :  { %9 = vsyncpa [#allocation3], 0  ;;  %s1220_s0 = inlined_call_operand.hbm [shape: f32[2,4,256], index: 0, kind: input, shape index: {}]   ;;  %s1221_s1 = inlined_call_operand.hbm [shape: s32[2,1,256], index: 1, kind: input, shape index: {}]   ;;  %s1222_s2 = inlined_call_operand.hbm [shape: f32[2,1,256], index: 2, kind: output, shape index: {0}]   ;;  %s1223_s3 = inlined_call_operand.hbm [shape: f32[2,1,256], index: 3, kind: output, shape index: {1}]  }
   0x1   :  { %11 = vsyncpa [#allocation3 + $0x1], 0 }
   0x2   :  { %12 = vsyncpa [#allocation6], 0 }
   0x3   :  { %14 = vsyncpa [#allocation6 + $0x1], 0 }
   0x4   :  { %15 = vsyncpa [#allocation4], 0 }
   0x5   :  { %17 = vsyncpa [#allocation4 + $0x1], 0 }
   0x6   :  { %18 = vsyncpa [#allocation9], 0 }
   0x7   :  { %20 = vsyncpa [#allocation9 + $0x1], 0  ;;  %s954_s12 = smov 0   ;;  %s956_s13 = smov 0  }
   0x8   :  { %s958_s14 = smov 0   ;;  %s960_s15 = smov 0  }
   0x9   :  { %s962_s16 = smov 0   ;;  %s964_s17 = smov 0  }
   0xa LB: > { %s646_s18 = sadd.s32 4294967295, %s925_s17   ;;  %s647_s19 = sadd.s32 4294967294, %s925_s17   ;;  %s925_s17 = sphi %s964_s17, %s26_s17   ;;  %s921_s16 = sphi %s962_s16, %s1237_s16   ;;  %s917_s15 = sphi %s960_s15, %s1236_s15   ;;  %s913_s14 = sphi %s958_s14, %s1235_s14   ;;  %s909_s13 = sphi %s956_s13, %s1234_s13   ;;  %s905_s12 = sphi %s954_s12, %s1233_s12  }
   0xb   : > { %s45_s20 = sadd.s32 1, %s921_s16  ;;  %s60_s21 = sadd.s32 1, %s913_s14 }
   0xc   : > { %p47_p0 = scmp.ge.s32.totalorder %s45_s20, 2  ;;  %p67_p1 = scmp.ne.s32.totalorder %s913_s14, %s909_s13 }
   0xd   : > { %p68_p2 = scmp.eq.s32.totalorder %s925_s17, 0  ;;  %p73_p3 = scmp.ne.s32.totalorder %s909_s13, %s905_s12 }
   0xe   : > { %s1239_s20 = smov (%p47_p0, %s45_s20), 0  ;;  %p74_p5 = scmp.eq.s32.totalorder %s646_s18, 0 }
   0xf   : > { %p995_p4 = por %p68_p2, %p67_p1  ;;  %s55_s23 = ssub.s32 %s921_s16, %s1239_s20 }
  0x10   : > { %p133_p6 = scmp.eq.s32.totalorder %s646_s18, 1  ;;  %p58_p7 = scmp.eq.s32.totalorder %s55_s23, 0 }
  0x11   : > { %p1001_p8 = por %p74_p5, %p73_p3  ;;  %p139_p10 = scmp.eq.s32.totalorder %s647_s19, 1 }
  0x12   : > { %p1005_p9 = por %p133_p6, %p67_p1  ;;  %p695_p13 = scmp.lt.s32.totalorder %s925_s17, 2 }
  0x13   : > { %s1010_s26 = scalar_select %p58_p7, %s913_s14, %s60_s21  }
  0x14   : > { %p1012_p11 = por %p139_p10, %p73_p3  ;;  %s1019_s28 = sand.u32 1, %s913_s14  }
  0x15   : > { %s650_s29 = sshll.u32 %s1019_s28, 3  ;;  %s669_s30 = sshll.u32 %s921_s16, 7 }
  0x16   : > { %s202_s6 = scalar_lea.hbm %s1220_s0, %s669_s30  ;;  %s191_s7 = scalar_lea.vmem [#allocation2], %s650_s29 }
  0x17   : > { %s204_s8 = sshll.u32 %s191_s7, 4  ;;  %p1028_p0 = pnand %p695_p13, %p995_p4  ;;  %s205_s8 = int_to_ptr.vmem [resolvable:$true] %s204_s8 }
  0x18   : > { %p656_p1 = scmp.ge.s32.totalorder %s925_s17, 1  ;;  %p233_p2 = scmp.lt.s32.totalorder %s925_s17, 3 }
  0x19   : > { %s188_s10 = scalar_lea.sflag [#allocation3], %s1019_s28  ;;  %p757_p3 = pneg %p1028_p0 }
  0x1a   : > { %s768_s11 = scalar_lea.vmem %s205_s8, 128  ;;  %s927_s18 = smov [#allocation2]  }
  0x1b   : > { %p769_p5 = scmp.ne.s32.totalorder %s205_s8, %s768_s11  ;;  %s773_s19 = sshll.u32 %s927_s18, 4  ;;  %s774_s19 = int_to_ptr.vmem [resolvable:$false] %s773_s19 }
  0x1c   : > { %s775_s21 = scalar_lea.vmem %s774_s19, 256  ;;  %p776_p4 = scmp.lt.s32.totalorder %s205_s8, %s774_s19 }
  0x1d   : > { %p771_p6 = pnand %p769_p5, %p757_p3  ;;  %p777_p10 = scmp.lt.s32.totalorder %s775_s21, %s768_s11 }
  0x1f   : > { %p772_p7 = pneg %p771_p6  ;;  %p778_p13 = por %p777_p10, %p776_p4 }
  0x21   : > { %p779_p12 = pnand %p778_p13, %p772_p7 }
  0x23   : > { %782 = shalt.err (!%p779_p12)
}
  0x24   : > { %684 = dma.hbm_to_vmem [thread:$0]  (!%p1028_p0), %s202_s6, 128, %s205_s8, %s188_s10  }
  0x25   : > { %p1046_p5 = pnand %p656_p1, %p233_p2  ;;  %s653_s23 = sshll.u32 %s1019_s28, 1 }
  0x26   : > { %s670_s29 = sshll.u32 %s921_s16, 5  ;;  %s215_s7 = scalar_lea.vmem [#allocation5], %s653_s23 }
  0x27   : > { %s226_s5 = scalar_lea.hbm %s1221_s1, %s670_s29  ;;  %s228_s11 = sshll.u32 %s215_s7, 4  ;;  %s229_s11 = int_to_ptr.vmem [resolvable:$true] %s228_s11 }
  0x28   : > { %s212_s18 = scalar_lea.sflag [#allocation6], %s1019_s28  ;;  %s796_s19 = scalar_lea.vmem %s229_s11, 32 }
  0x29   : > { %p797_p12 = scmp.ne.s32.totalorder %s229_s11, %s796_s19  ;;  %s928_s6 = smov [#allocation5]  }
  0x2a   : > { %s801_s8 = sshll.u32 %s928_s6, 4  ;;  %s802_s8 = int_to_ptr.vmem [resolvable:$false] %s801_s8 }
  0x2b   : > { %p799_p6 = pnand %p797_p12, %p757_p3  ;;  %s803_s10 = scalar_lea.vmem %s802_s8, 64 }
  0x2c   : > { %p804_p1 = scmp.lt.s32.totalorder %s229_s11, %s802_s8  ;;  %p805_p2 = scmp.lt.s32.totalorder %s803_s10, %s796_s19 }
  0x2d   : > { %p800_p7 = pneg %p799_p6 }
  0x2e   : > { %p806_p4 = por %p805_p2, %p804_p1 }
  0x30   : > { %p807_p10 = pnand %p806_p4, %p800_p7 }
  0x32   : > { %810 = shalt.err (!%p807_p10)
}
  0x33   : > { %687 = dma.hbm_to_vmem [thread:$0]  (!%p1028_p0), %s226_s5, 32, %s229_s11, %s212_s18  }
  0x34   : > { %237 = sbr.rel (%p1046_p5) target bundleno = 164 (0xa4), region = 28  ;;  %s1064_s28 = sand.u32 (!%p1046_p5), 1, %s909_s13  }
  0x35   : > { %s657_s21 = sshll.u32 (!%p1046_p5), %s1064_s28, 3  ;;  %s240_s23 = scalar_lea.sflag (!%p1046_p5), [#allocation3], %s1064_s28 }
  0x36   : > { %s243_s29 = scalar_lea.vmem (!%p1046_p5), [#allocation2], %s657_s21 }
  0x39   : > { %888 = dma.done.wait (%p1001_p8), %s240_s23, 128  }
  0x3a   : > { %890 = vsyncadd (%p1001_p8), %s240_s23, 4294967168  ;;  %s658_s9 = sshll.u32 %s1064_s28, 1  ;;  %s249_s22 = scalar_lea.sflag [#allocation6], %s1064_s28 }
  0x3b   : > { %s252_s30 = scalar_lea.vmem [#allocation5], %s658_s9 }
  0x3c   : > { %892 = dma.done.wait (%p1001_p8), %s249_s22, 32  }
  0x3d   : > { %894 = vsyncadd (%p1001_p8), %s249_s22, 4294967264  ;;  %v343_v0 = vlaneseq  ;;  %s1082_s4 = scalar_lea.vmem [#allocation7], %s658_s9  ;;  %v929_v2 = vmov 0.0   ;;  %s1087_s5 = scalar_lea.vmem [#allocation8], %s658_s9  ;;  %v930_v3 = vmov 1966171168  }
  0x3e   : > { %v419_v4 = vunpack.c.l.s4 %v930_v3  ;;  %vm300_vm1 = vcmask 1043456   ;;  %v1094_v6 = vld [vmem:[%s243_s29] sm:$0xff]  ;;  %v1096_v7 = vld [vmem:[%s252_s30] sm:$0x3]  ;;  %v931_v15 = vmov 0   ;;  %s671_s24 = sshll.u32 %s917_s15, 5 }
  0x3f   : > { %vm1078_vm0 = vcmp.lt.s32.totalorder %v343_v0, 256  ;;  %v1092_v5 = vshrl.u32 %v343_v0, 7  ;;  %v298_v8 = vcombine.high %v1094_v6, %v1094_v6  ;;  %v301_v9 = vsel %vm300_vm1, %v1094_v6, -inf  ;;  %s498_s7 = sshll.u32 %s1087_s5, 4  ;;  %s1133_s19 = scalar_lea.hbm %s1223_s3, %s671_s24  ;;  %s499_s7 = int_to_ptr.vmem [resolvable:$true] %s498_s7 }
  0x40   : > { %412 = vst.msk [vmem:[%s1082_s4] sm:$0x3] %vm1078_vm0, %v929_v2  ;;  %413 = vst.msk [vmem:[%s1087_s5] sm:$0x3] %vm1078_vm0, %v929_v2  ;;  %v420_v10 = vunpack.c.0.s8 %v419_v4  ;;  %v302_v11 = vrot.slane %v301_v9, 4  ;;  %vm386_vm2 = vcmp.ne.s32.totalorder %v1096_v7, 4294967196 }
  0x41   : > { %v347_v12 = vsub.s32 0, %v1092_v5  ;;  %v351_v13 = vsub.s32 1, %v1092_v5  ;;  %v308_v14 = vsel %vm300_vm1, %v298_v8, -inf  ;;  %v387_v16 = vsel %vm386_vm2, 1, %v931_v15  ;;  %s466_s6 = scalar_lea.sflag [#allocation9], %s1064_s28  ;;  %s811_s8 = scalar_lea.vmem %s499_s7, 32 }
  0x42   : > { %v303_v17 = vmax.f32 %v301_v9, %v302_v11  ;;  %v309_v18 = vrot.slane %v308_v14, 4  ;;  %v1115_v21 = vsub.s32 %v420_v10, %v1092_v5  ;;  %p812_p8 = scmp.ne.s32.totalorder %s499_s7, %s811_s8  ;;  %s932_s10 = smov [#allocation8]  }
  0x43   : > { %v1108_v19 = vrot.slane %v387_v16, %v347_v12  ;;  %v1112_v20 = vrot.slane %v387_v16, %v351_v13  ;;  %s815_s21 = sshll.u32 %s932_s10, 4  ;;  %s816_s21 = int_to_ptr.vmem [resolvable:$false] %s815_s21 }
  0x44   : > { %v304_v22 = vrot.slane %v303_v17, 2  ;;  %v310_v23 = vmax.f32 %v308_v14, %v309_v18  ;;  %p813_p0 = pnand %p812_p8, %p1005_p9  ;;  %s817_s23 = scalar_lea.vmem %s816_s21, 64 }
  0x45   : > { %vm396_vm3 = vcmp.ne.s32.totalorder %v1108_v19, 0  ;;  %vm397_vm4 = vcmp.ne.s32.totalorder %v1112_v20, 0  ;;  %p818_p13 = scmp.lt.s32.totalorder %s499_s7, %s816_s21  ;;  %p819_p5 = scmp.lt.s32.totalorder %s817_s23, %s811_s8 }
  0x46   : > { %v402_v24 = vsel %vm396_vm3, 1.0, %v929_v2  ;;  %v403_v25 = vsel %vm397_vm4, 1.0, %v929_v2  ;;  %v305_v26 = vmax.f32 %v303_v17, %v304_v22  ;;  %v311_v27 = vrot.slane %v310_v23, 2  ;;  %p814_p3 = pneg %p813_p0 }
  0x47   : > { %v442_v28 = vcombine.low %v402_v24, %v403_v25  ;;  %v439_v32 = vld [vmem:[%s1087_s5] sm:$0x3]  ;;  %p820_p12 = por %p819_p5, %p818_p13 }
  0x48   : > { %v306_v29 = vrot.slane %v305_v26, 1  ;;  %v312_v30 = vmax.f32 %v310_v23, %v311_v27 }
  0x49   : > { %v449_v31 = vrot.slane %v442_v28, %v1115_v21  ;;  %p821_p6 = pnand %p820_p12, %p814_p3 }
  0x4a   : > { %v307_v33 = vmax.f32 %v305_v26, %v306_v29  ;;  %v313_v34 = vrot.slane %v312_v30, 1 }
  0x4b   : > { %v456_v35 = vrot.slane %v449_v31, %v1115_v21 }
  0x4c   : > { %v314_v36 = vmax.f32 %v312_v30, %v313_v34 }
  0x4d   : > { %v458_v37 = vadd.f32 %v456_v35, %v439_v32 }
  0x4e   : > { %v317_v38 = vcombine.low %v307_v33, %v314_v36 }
  0x4f   : > { %459 = vst.msk [vmem:[%s1087_s5] sm:$0x3] %vm1078_vm0, %v458_v37 }
  0x50   : > { %824 = shalt.err (!%p821_p6)
}
  0x51   : > { %s825_s29 = scalar_lea.hbm %s1133_s19, 32  ;;  %s829_s30 = scalar_lea.hbm %s1223_s3, 64 }
  0x52   : > { %p826_p7 = scmp.ne.s32.totalorder %s1133_s19, %s825_s29  ;;  %p830_p4 = scmp.lt.s32.totalorder %s1133_s19, %s1223_s3 }
  0x53   : > { %p831_p10 = scmp.lt.s32.totalorder %s829_s30, %s825_s29 }
  0x54   : > { %p827_p1 = pnand %p826_p7, %p1005_p9 }
  0x55   : > { %p832_p8 = por %p831_p10, %p830_p4 }
  0x56   : > { %p828_p2 = pneg %p827_p1 }
  0x58   : > { %p833_p0 = pnand %p832_p8, %p828_p2 }
  0x5a   : > { %836 = shalt.err (!%p833_p0)
}
  0x5b   : > { %678 = dma.vmem_to_hbm [thread:$0]  (%p1005_p9), %s499_s7, 32, %s1133_s19, %s466_s6   ;;  %v319_v39 = vsub.f32 %v1094_v6, %v317_v38  ;;  %v348_v41 = vrot.slane %v1096_v7, %v347_v12  ;;  %v352_v42 = vrot.slane %v1096_v7, %v351_v13  ;;  %v414_v26 = vld [vmem:[%s1082_s4] sm:$0x3] }
  0x5c   : > { %s482_s7 = sshll.u32 %s1082_s4, 4  ;;  %s480_s6 = scalar_lea.hbm %s1222_s2, %s671_s24  ;;  %s483_s7 = int_to_ptr.vmem [resolvable:$true] %s482_s7 }
  0x5d   : > { %v320_v40 = vmul.f32 1.442695, %v319_v39  ;;  %vm353_vm5 = vcmp.eq.s32.totalorder %v1092_v5, %v348_v41  ;;  %v356_v43 = vcombine.high %v319_v39, %v319_v39  ;;  %vm354_vm6 = vcmp.eq.s32.totalorder %v1092_v5, %v352_v42  ;;  %s461_s8 = scalar_lea.sflag [#allocation4], %s1064_s28  ;;  %s837_s10 = scalar_lea.vmem %s483_s7, 32 }
  0x5e   : > { %v358_v45 = vsel %vm353_vm5, %v319_v39, 0.0  ;;  %p838_p3 = scmp.ne.s32.totalorder %s483_s7, %s837_s10  ;;  %s933_s21 = smov [#allocation7]  }
  0x5f   : > { %749 = vpow2.f32 %v320_v40  ;;  %v359_v49 = vsel %vm354_vm6, %v356_v43, 0.0  ;;  %v360_v51 = vsel %vm300_vm1, %v358_v45, 0.0  ;;  %s841_s23 = sshll.u32 %s933_s21, 4  ;;  %s842_s23 = int_to_ptr.vmem [resolvable:$false] %s841_s23 }
  0x60   : > { %v367_v54 = vsel %vm300_vm1, %v359_v49, 0.0  ;;  %v361_v57 = vrot.slane %v360_v51, 4  ;;  %p839_p13 = pnand %p838_p3, %p1005_p9  ;;  %s843_s29 = scalar_lea.vmem %s842_s23, 64 }
  0x61   : > { %v368_v60 = vrot.slane %v367_v54, 4  ;;  %p844_p12 = scmp.lt.s32.totalorder %s483_s7, %s842_s23  ;;  %p845_p6 = scmp.lt.s32.totalorder %s843_s29, %s837_s10 }
  0x62   : > { %v362_v63 = vadd.f32 %v361_v57, %v360_v51  ;;  %p840_p5 = pneg %p839_p13 }
  0x63   : > { %v369_v3 = vadd.f32 %v368_v60, %v367_v54  ;;  %p846_p7 = por %p845_p6, %p844_p12 }
  0x64   : > { %v363_v5 = vrot.slane %v362_v63, 2 }
  0x65   : > { %v370_v6 = vrot.slane %v369_v3, 2  ;;  %p847_p1 = pnand %p846_p7, %p840_p5 }
  0x66   : > { %v364_v7 = vadd.f32 %v363_v5, %v362_v63 }
  0x67   : > { %v371_v8 = vadd.f32 %v370_v6, %v369_v3 }
  0x68   : > { %v365_v9 = vrot.slane %v364_v7, 1 }
  0x69   : > { %v372_v10 = vrot.slane %v371_v8, 1 }
  0x6a   : > { %v366_v11 = vadd.f32 %v365_v9, %v364_v7 }
  0x6b   : > { %v373_v14 = vadd.f32 %v372_v10, %v371_v8 }
  0x6c   : > { %v750_v44 = vpop.eup %749 }
  0x6d   : > { %v323_v46 = vcombine.high %v750_v44, %v750_v44  ;;  %v325_v47 = vsel %vm300_vm1, %v750_v44, 0.0 }
  0x6e   : > { %v326_v48 = vrot.slane %v325_v47, 4 }
  0x6f   : > { %v332_v50 = vsel %vm300_vm1, %v323_v46, 0.0 }
  0x70   : > { %v327_v52 = vadd.f32 %v326_v48, %v325_v47  ;;  %v333_v53 = vrot.slane %v332_v50, 4 }
  0x72   : > { %v328_v55 = vrot.slane %v327_v52, 2  ;;  %v334_v56 = vadd.f32 %v333_v53, %v332_v50 }
  0x74   : > { %v329_v58 = vadd.f32 %v328_v55, %v327_v52  ;;  %v335_v59 = vrot.slane %v334_v56, 2 }
  0x76   : > { %v330_v61 = vrot.slane %v329_v58, 1  ;;  %v336_v62 = vadd.f32 %v335_v59, %v334_v56 }
  0x78   : > { %v331_v0 = vadd.f32 %v330_v61, %v329_v58  ;;  %v337_v2 = vrot.slane %v336_v62, 1 }
  0x7a   : > { %v338_v4 = vadd.f32 %v337_v2, %v336_v62  ;;  %751 = vlog2.f32 %v331_v0 }
  0x7c   : > { %753 = vlog2.f32 %v338_v4 }
  0x87   : > { %v752_v12 = vpop.eup %751 }
  0x88   : > { %v340_v13 = vmul.f32 0.6931472, %v752_v12 }
  0x89   : > { %v754_v15 = vpop.eup %753 }
  0x8a   : > { %v342_v16 = vmul.f32 0.6931472, %v754_v15  ;;  %v374_v17 = vsub.f32 %v340_v13, %v366_v11 }
  0x8c   : > { %v375_v18 = vsub.f32 %v342_v16, %v373_v14  ;;  %v400_v22 = vsel %vm396_vm3, %v374_v17, 0.0 }
  0x8e   : > { %v401_v23 = vsel %vm397_vm4, %v375_v18, 0.0 }
  0x8f   : > { %v417_v24 = vcombine.low %v400_v22, %v401_v23 }
  0x91   : > { %v424_v25 = vrot.slane %v417_v24, %v1115_v21 }
  0x93   : > { %v431_v27 = vrot.slane %v424_v25, %v1115_v21 }
  0x95   : > { %v433_v28 = vadd.f32 %v431_v27, %v414_v26 }
  0x97   : > { %438 = vst.msk [vmem:[%s1082_s4] sm:$0x3] %vm1078_vm0, %v433_v28 }
  0x98   : > { %850 = shalt.err (!%p847_p1)
}
  0x99   : > { %s851_s15 = scalar_lea.hbm %s480_s6, 32  ;;  %s855_s24 = scalar_lea.hbm %s1222_s2, 64 }
  0x9a   : > { %p852_p2 = scmp.ne.s32.totalorder %s480_s6, %s851_s15  ;;  %p856_p8 = scmp.lt.s32.totalorder %s480_s6, %s1222_s2 }
  0x9b   : > { %p857_p0 = scmp.lt.s32.totalorder %s855_s24, %s851_s15 }
  0x9c   : > { %p853_p4 = pnand %p852_p2, %p1005_p9 }
  0x9d   : > { %p858_p3 = por %p857_p0, %p856_p8 }
  0x9e   : > { %p854_p10 = pneg %p853_p4 }
  0xa0   : > { %p859_p13 = pnand %p858_p3, %p854_p10 }
  0xa2   : > { %862 = shalt.err (!%p859_p13)
}
  0xa3   : > { %677 = dma.vmem_to_hbm [thread:$0]  (%p1005_p9), %s483_s7, 32, %s480_s6, %s461_s8  }
  0xa4 PF: > { %s510_s30 = sand.u32 1, %s905_s12   ;;  %p1232_p5 = scmp.ge.s32.totalorder %s925_s17, 2 }
  0xa5   : > { %s511_s5 = scalar_lea.sflag [#allocation4], %s510_s30 }
  0xa6   : > { %p689_p12 = pnand %p1232_p5, %p1012_p11 }
  0xa8   : > { %p690_p6 = pneg %p689_p12 }
  0xaa   : > { %896 = dma.done.wait (%p690_p6), %s511_s5, 32  }
  0xab   : > { %898 = vsyncadd (%p690_p6), %s511_s5, 4294967264  ;;  %s520_s11 = scalar_lea.sflag [#allocation9], %s510_s30 }
  0xac   : > { %900 = dma.done.wait (%p690_p6), %s520_s11, 32  }
  0xad   : > { %902 = vsyncadd (%p690_p6), %s520_s11, 4294967264  ;;  %s26_s17 = sadd.s32 1, %s925_s17   ;;  %s1233_s12 = smov %s909_s13 }
  0xae   : > { %p23_p7 = scmp.ge.s32.totalorder %s26_s17, 4   ;;  %s1234_s13 = smov %s913_s14 }
  0xaf   : > { %s1235_s14 = smov %s1010_s26  ;;  %s1236_s15 = smov %s921_s16 }
  0xb0   : > { %s1237_s16 = smov %s1239_s20  ;;  %25 = sbr.rel (!%p23_p7) target bundleno = 10 (0xa), region = 107 }
  0xb5   :  { %525 = vsyncpa [#allocation3], 1 }
  0xb6   :  { %527 = vsyncpa [#allocation3 + $0x1], 1 }
  0xb7   :  { %528 = vsyncpa [#allocation6], 1 }
  0xb8   :  { %530 = vsyncpa [#allocation6 + $0x1], 1 }
  0xb9   :  { %531 = vsyncpa [#allocation4], 1 }
  0xba   :  { %533 = vsyncpa [#allocation4 + $0x1], 1 }
  0xbb   :  { %534 = vsyncpa [#allocation9], 1 }
  0xbc   :  { %536 = vsyncpa [#allocation9 + $0x1], 1 }

</bundles_post_ra>
